<compile_context>
chip_gen: v7x
topology: tpu7x:2x2x1
jax: 0.10.0
libtpu: 0.0.40
codegen_flags: <defaults>
</compile_context>

<pallas_src>
import numpy as np
import jax
import jax.numpy as jnp
from jax.experimental import pallas as pl
from jax.experimental.pallas import tpu as pltpu

# ---------------- model dims (small, consistent with the module) ----------------
B = 2          # batch
S = 8          # sequence length
D = 32         # d_model
H = 4          # num_heads
HD = D // H    # head dim
DFF = 64       # d_ff (module default is 512; small value for the demo)
EPS = 1e-5     # nn.LayerNorm default eps


def _layernorm(x, gamma, beta):
    mu = jnp.mean(x, axis=-1, keepdims=True)
    var = jnp.mean((x - mu) ** 2, axis=-1, keepdims=True)
    return (x - mu) * jax.lax.rsqrt(var + EPS) * gamma + beta


def transformer_block_kernel(x_ref, wqkv_ref, bqkv_ref, wo_ref, w1_ref, b1_ref,
                             w2_ref, vec_ref, bdmask_ref, segsum_ref, o_ref):
    # vec_ref rows: 0=bo, 1=g1, 2=be1, 3=b2, 4=g2, 5=be2
    x = x_ref[...]                                                   # (S, D)  (one sequence)

    # ---- fused QKV projection (1/sqrt(HD) already folded into the Q columns/bias) ----
    qkv = jnp.dot(x, wqkv_ref[...], preferred_element_type=jnp.float32) + bqkv_ref[...]
    q = qkv[:, 0 * D:1 * D]
    k = qkv[:, 1 * D:2 * D]
    v = qkv[:, 2 * D:3 * D]

    # ---- block-diagonal K / V: row h*S + j holds head h's key/value for position j inside
    # that head's HD-lane band, zero elsewhere.  Sublane concat + VPU multiply by a
    # host-precomputed 0/1 constant (no runtime iota / divide / select).
    bd = bdmask_ref[...]                                             # (H*S, D)
    k_bd = jnp.concatenate([k] * H, axis=0) * bd                     # (H*S, D)
    v_bd = jnp.concatenate([v] * H, axis=0) * bd                     # (H*S, D)

    # ---- all-head scores in one K=D matmul: column block h of s equals q_h @ k_h^T ----
    s = jax.lax.dot_general(q, k_bd, (((1,), (1,)), ((), ())),
                            preferred_element_type=jnp.float32)      # (S, H*S)

    # ---- segmented (per-head) softmax over each S-column block.
    # Global row max is a valid stability shift (it cancels in the per-segment normalization);
    # per-segment sums come from one matmul with a block-diagonal ones constant.
    s = s - jnp.max(s, axis=-1, keepdims=True)
    p = jnp.exp(s)
    denom = jnp.dot(p, segsum_ref[...], preferred_element_type=jnp.float32)   # (S, H*S)
    r = pl.reciprocal(denom, approx=True)        # EUP slot (frees VALU)
    r = r * (2.0 - denom * r)                    # one Newton step -> ~f32 accuracy
    p = p * r

    # ---- per-head contexts land in their own lane bands of one (S, D) array; then a single
    # fused out-projection matmul (no per-head K=HD matmuls, no concatenate over heads).
    ctx = jnp.dot(p, v_bd, preferred_element_type=jnp.float32)       # (S, D)
    attn = jnp.dot(ctx, wo_ref[...], preferred_element_type=jnp.float32) + vec_ref[0:1, :]

    # ---- residual + LayerNorm 1 ----
    x1 = _layernorm(x + attn, vec_ref[1:2, :], vec_ref[2:3, :])

    # ---- feed-forward ----
    hid = jnp.dot(x1, w1_ref[...], preferred_element_type=jnp.float32) + b1_ref[...]
    hid = jnp.maximum(hid, 0.0)
    ff = jnp.dot(hid, w2_ref[...], preferred_element_type=jnp.float32) + vec_ref[3:4, :]

    # ---- residual + LayerNorm 2 ----
    o_ref[...] = _layernorm(x1 + ff, vec_ref[4:5, :], vec_ref[5:6, :]).astype(o_ref.dtype)


PACKED_ORDER = ("w_qkv", "b_qkv", "wo", "w1", "b1", "w2", "vec_d")


def transformer_block(x, packed):
    """x: (B, S, D) float32; packed: dict produced by pack_params()."""
    Bn, Sn, Dn = x.shape
    hd = Dn // H

    # Structural constants built once on the host (trace-time), passed as ordinary inputs.
    row_head = np.arange(H * Sn)[:, None] // Sn          # head index of each K/V row
    col_head = np.arange(Dn)[None, :] // hd              # head index of each lane
    bd_mask = jnp.asarray((row_head == col_head).astype(np.float32))          # (H*S, D)
    seg = np.arange(H * Sn) // Sn
    seg_sum = jnp.asarray((seg[:, None] == seg[None, :]).astype(np.float32))  # (H*S, H*S)

    consts = [packed[name] for name in PACKED_ORDER] + [bd_mask, seg_sum]

    def full_spec(a):
        # Whole array resident in VMEM; constant index map -> loaded once, not re-DMA'd per step.
        return pl.BlockSpec(a.shape, lambda b, _n=a.ndim: (0,) * _n)

    out = pl.pallas_call(
        transformer_block_kernel,
        out_shape=jax.ShapeDtypeStruct((Bn, Sn, Dn), jnp.float32),
        grid=(Bn,),
        in_specs=[pl.BlockSpec((None, Sn, Dn), lambda b: (b, 0, 0))]
                 + [full_spec(a) for a in consts],
        out_specs=pl.BlockSpec((None, Sn, Dn), lambda b: (b, 0, 0)),
        compiler_params=pltpu.CompilerParams(dimension_semantics=("parallel",)),
    )(x, *consts)
    return out


def make_params(key):
    """Deterministic parameter init. Weights stored pre-transposed: y = x @ W + b."""
    ks = jax.random.split(key, 8)

    def w(k, shape, scale=0.1):
        return (scale * jax.random.normal(k, shape)).astype(jnp.float32)

    return {
        # in_proj (q, k, v): PyTorch stores (3D, D); here each is (D, D) transposed
        "wq": w(ks[0], (D, D)), "wk": w(ks[1], (D, D)), "wv": w(ks[2], (D, D)),
        "bq": jnp.zeros((1, D), jnp.float32),
        "bk": jnp.zeros((1, D), jnp.float32),
        "bv": jnp.zeros((1, D), jnp.float32),
        # out_proj
        "wo": w(ks[3], (D, D)), "bo": w(ks[4], (1, D), 0.01),
        # layernorm 1
        "g1": jnp.ones((1, D), jnp.float32), "be1": jnp.zeros((1, D), jnp.float32),
        # feed-forward
        "w1": w(ks[5], (D, DFF)), "b1": w(ks[6], (1, DFF), 0.01),
        "w2": w(ks[7], (DFF, D)), "b2": jnp.zeros((1, D), jnp.float32),
        # layernorm 2
        "g2": jnp.ones((1, D), jnp.float32), "be2": jnp.zeros((1, D), jnp.float32),
    }


def pack_params(p):
    """One-time transform: fuse QKV, fold 1/sqrt(head_dim) into Q, stack (1, D) vectors."""
    scale = jnp.float32(1.0 / jnp.sqrt(jnp.float32(HD)))
    return {
        "w_qkv": jnp.concatenate([p["wq"] * scale, p["wk"], p["wv"]], axis=1),   # (D, 3D)
        "b_qkv": jnp.concatenate([p["bq"] * scale, p["bk"], p["bv"]], axis=1),   # (1, 3D)
        "wo": p["wo"],                                                           # (D, D)
        "w1": p["w1"], "b1": p["b1"], "w2": p["w2"],
        # rows: 0=bo, 1=g1, 2=be1, 3=b2, 4=g2, 5=be2
        "vec_d": jnp.concatenate(
            [p["bo"], p["g1"], p["be1"], p["b2"], p["g2"], p["be2"]], axis=0),   # (6, D)
    }


def reference_forward(x, p):
    """Pure-JAX reference (matches PyTorch eval-mode TransformerBlock.forward)."""
    q = x @ p["wq"] + p["bq"]
    k = x @ p["wk"] + p["bk"]
    v = x @ p["wv"] + p["bv"]
    qh = q.reshape(B, S, H, HD).transpose(0, 2, 1, 3)
    kh = k.reshape(B, S, H, HD).transpose(0, 2, 1, 3)
    vh = v.reshape(B, S, H, HD).transpose(0, 2, 1, 3)
    scores = jnp.einsum("bhqd,bhkd->bhqk", qh, kh) / jnp.sqrt(jnp.float32(HD))
    pw = jax.nn.softmax(scores, axis=-1)
    attn = jnp.einsum("bhqk,bhkd->bhqd", pw, vh).transpose(0, 2, 1, 3).reshape(B, S, D)
    attn = attn @ p["wo"] + p["bo"]
    x1 = _layernorm(x + attn, p["g1"], p["be1"])
    ff = jnp.maximum(x1 @ p["w1"] + p["b1"], 0.0) @ p["w2"] + p["b2"]
    return _layernorm(x1 + ff, p["g2"], p["be2"])


if __name__ == "__main__":
    key = jax.random.PRNGKey(0)
    kx, kp = jax.random.split(key)
    x = jax.random.normal(kx, (B, S, D), dtype=jnp.float32)
    params = make_params(kp)
    packed = pack_params(params)

    out = jax.block_until_ready(transformer_block(x, packed))
    ref = reference_forward(x, params)

    assert out.shape == (B, S, D)
    # Tolerance ~f32: approx reciprocal is refined with one Newton step; remaining diffs are
    # accumulation-order effects (Q-scale folding, fused matmuls).
    max_err = float(jnp.max(jnp.abs(out - ref)))
    assert jnp.allclose(out, ref, atol=2e-4, rtol=2e-4), f"mismatch vs reference, max_err={max_err}"

    print("KERNEL_OK")
</pallas_src>

<mosaic_0001>
module attributes {stable_mosaic.version = 11 : i64} {
  func.func @transformer_block_kernel(%arg0: i32, %arg1: memref<1x8x32xf32, #tpu.memory_space<vmem>>, %arg2: memref<32x96xf32, #tpu.memory_space<vmem>>, %arg3: memref<1x96xf32, #tpu.memory_space<vmem>>, %arg4: memref<32x32xf32, #tpu.memory_space<vmem>>, %arg5: memref<32x64xf32, #tpu.memory_space<vmem>>, %arg6: memref<1x64xf32, #tpu.memory_space<vmem>>, %arg7: memref<64x32xf32, #tpu.memory_space<vmem>>, %arg8: memref<6x32xf32, #tpu.memory_space<vmem>>, %arg9: memref<32x32xf32, #tpu.memory_space<vmem>>, %arg10: memref<32x32xf32, #tpu.memory_space<vmem>>, %arg11: memref<1x8x32xf32, #tpu.memory_space<vmem>>) attributes {dimension_semantics = [#tpu.dimension_semantics<parallel>], iteration_bounds = array<i64: 2>, scalar_prefetch = 0 : i64, scratch_operands = 0 : i64, tpu.core_type = #tpu.core_type<tc>, window_params = [{transform_indices = @transform_0, window_bounds = array<i64: 1, 8, 32>}, {pipeline_mode = #tpu.pipeline_mode<synchronous>, transform_indices = @transform_1, window_bounds = array<i64: 32, 96>}, {pipeline_mode = #tpu.pipeline_mode<synchronous>, transform_indices = @transform_2, window_bounds = array<i64: 1, 96>}, {pipeline_mode = #tpu.pipeline_mode<synchronous>, transform_indices = @transform_3, window_bounds = array<i64: 32, 32>}, {pipeline_mode = #tpu.pipeline_mode<synchronous>, transform_indices = @transform_4, window_bounds = array<i64: 32, 64>}, {pipeline_mode = #tpu.pipeline_mode<synchronous>, transform_indices = @transform_5, window_bounds = array<i64: 1, 64>}, {pipeline_mode = #tpu.pipeline_mode<synchronous>, transform_indices = @transform_6, window_bounds = array<i64: 64, 32>}, {pipeline_mode = #tpu.pipeline_mode<synchronous>, transform_indices = @transform_7, window_bounds = array<i64: 6, 32>}, {pipeline_mode = #tpu.pipeline_mode<synchronous>, transform_indices = @transform_8, window_bounds = array<i64: 32, 32>}, {pipeline_mode = #tpu.pipeline_mode<synchronous>, transform_indices = @transform_9, window_bounds = array<i64: 32, 32>}, {transform_indices = @transform_10, window_bounds = array<i64: 1, 8, 32>}]} {
    %c0 = arith.constant 0 : index
    %c0_0 = arith.constant 0 : index
    %c0_1 = arith.constant 0 : index
    %0 = vector.load %arg1[%c0, %c0_0, %c0_1] : memref<1x8x32xf32, #tpu.memory_space<vmem>>, vector<1x8x32xf32>
    %1 = vector.shape_cast %0 : vector<1x8x32xf32> to vector<8x32xf32>
    %c0_2 = arith.constant 0 : index
    %c0_3 = arith.constant 0 : index
    %2 = vector.load %arg2[%c0_2, %c0_3] : memref<32x96xf32, #tpu.memory_space<vmem>>, vector<32x96xf32>
    %cst = arith.constant dense<0.000000e+00> : vector<8x96xf32>
    %3 = tpu.matmul %1, %2, %cst {dimension_numbers = #tpu.dot_dimension_numbers<[1], [0], [0], [1], [0, 0, 1, 1], [], []>} : vector<8x32xf32>, vector<32x96xf32>, vector<8x96xf32> -> vector<8x96xf32>
    %c0_4 = arith.constant 0 : index
    %c0_5 = arith.constant 0 : index
    %4 = vector.load %arg3[%c0_4, %c0_5] : memref<1x96xf32, #tpu.memory_space<vmem>>, vector<1x96xf32>
    %5 = vector.broadcast %4 : vector<1x96xf32> to vector<8x96xf32>
    %6 = arith.addf %3, %5 : vector<8x96xf32>
    %7 = vector.extract_strided_slice %6 {offsets = [0, 0], sizes = [8, 32], strides = [1, 1]} : vector<8x96xf32> to vector<8x32xf32>
    %8 = vector.extract_strided_slice %6 {offsets = [0, 32], sizes = [8, 32], strides = [1, 1]} : vector<8x96xf32> to vector<8x32xf32>
    %9 = vector.extract_strided_slice %6 {offsets = [0, 64], sizes = [8, 32], strides = [1, 1]} : vector<8x96xf32> to vector<8x32xf32>
    %c0_6 = arith.constant 0 : index
    %c0_7 = arith.constant 0 : index
    %10 = vector.load %arg9[%c0_6, %c0_7] : memref<32x32xf32, #tpu.memory_space<vmem>>, vector<32x32xf32>
    %11 = tpu.concatenate %8, %8, %8, %8 in 0 : vector<8x32xf32>, vector<8x32xf32>, vector<8x32xf32>, vector<8x32xf32> -> vector<32x32xf32>
    %12 = arith.mulf %11, %10 : vector<32x32xf32>
    %13 = tpu.concatenate %9, %9, %9, %9 in 0 : vector<8x32xf32>, vector<8x32xf32>, vector<8x32xf32>, vector<8x32xf32> -> vector<32x32xf32>
    %14 = arith.mulf %13, %10 : vector<32x32xf32>
    %cst_8 = arith.constant dense<0.000000e+00> : vector<8x32xf32>
    %15 = tpu.matmul %7, %12, %cst_8 {dimension_numbers = #tpu.dot_dimension_numbers<[1], [1], [0], [0], [0, 0, 1, 0], [], []>} : vector<8x32xf32>, vector<32x32xf32>, vector<8x32xf32> -> vector<8x32xf32>
    %cst_9 = arith.constant dense<0xFF800000> : vector<8xf32>
    %16 = vector.multi_reduction <maximumf>, %15, %cst_9 [1] : vector<8x32xf32> to vector<8xf32>
    %17 = vector.shape_cast %16 : vector<8xf32> to vector<8x1xf32>
    %18 = vector.broadcast %17 : vector<8x1xf32> to vector<8x32xf32>
    %19 = arith.subf %15, %18 : vector<8x32xf32>
    %20 = math.exp %19 : vector<8x32xf32>
    %c0_10 = arith.constant 0 : index
    %c0_11 = arith.constant 0 : index
    %21 = vector.load %arg10[%c0_10, %c0_11] : memref<32x32xf32, #tpu.memory_space<vmem>>, vector<32x32xf32>
    %cst_12 = arith.constant dense<0.000000e+00> : vector<8x32xf32>
    %22 = tpu.matmul %20, %21, %cst_12 {dimension_numbers = #tpu.dot_dimension_numbers<[1], [0], [0], [1], [0, 0, 1, 1], [], []>} : vector<8x32xf32>, vector<32x32xf32>, vector<8x32xf32> -> vector<8x32xf32>
    %23 = tpu.reciprocal %22 {approx = true} : vector<8x32xf32> -> vector<8x32xf32>
    %24 = arith.mulf %22, %23 : vector<8x32xf32>
    %cst_13 = arith.constant 2.000000e+00 : f32
    %25 = vector.broadcast %cst_13 : f32 to vector<8x32xf32>
    %26 = arith.subf %25, %24 : vector<8x32xf32>
    %27 = arith.mulf %23, %26 : vector<8x32xf32>
    %28 = arith.mulf %20, %27 : vector<8x32xf32>
    %cst_14 = arith.constant dense<0.000000e+00> : vector<8x32xf32>
    %29 = tpu.matmul %28, %14, %cst_14 {dimension_numbers = #tpu.dot_dimension_numbers<[1], [0], [0], [1], [0, 0, 1, 1], [], []>} : vector<8x32xf32>, vector<32x32xf32>, vector<8x32xf32> -> vector<8x32xf32>
    %c0_15 = arith.constant 0 : index
    %c0_16 = arith.constant 0 : index
    %30 = vector.load %arg4[%c0_15, %c0_16] : memref<32x32xf32, #tpu.memory_space<vmem>>, vector<32x32xf32>
    %cst_17 = arith.constant dense<0.000000e+00> : vector<8x32xf32>
    %31 = tpu.matmul %29, %30, %cst_17 {dimension_numbers = #tpu.dot_dimension_numbers<[1], [0], [0], [1], [0, 0, 1, 1], [], []>} : vector<8x32xf32>, vector<32x32xf32>, vector<8x32xf32> -> vector<8x32xf32>
    %c0_18 = arith.constant 0 : index
    %c0_19 = arith.constant 0 : index
    %32 = vector.load %arg8[%c0_18, %c0_19] : memref<6x32xf32, #tpu.memory_space<vmem>>, vector<1x32xf32>
    %33 = vector.broadcast %32 : vector<1x32xf32> to vector<8x32xf32>
    %34 = arith.addf %31, %33 : vector<8x32xf32>
    %35 = arith.addf %1, %34 : vector<8x32xf32>
    %c1 = arith.constant 1 : index
    %c0_20 = arith.constant 0 : index
    %36 = vector.load %arg8[%c1, %c0_20] : memref<6x32xf32, #tpu.memory_space<vmem>>, vector<1x32xf32>
    %c2 = arith.constant 2 : index
    %c0_21 = arith.constant 0 : index
    %37 = vector.load %arg8[%c2, %c0_21] : memref<6x32xf32, #tpu.memory_space<vmem>>, vector<1x32xf32>
    %cst_22 = arith.constant dense<0.000000e+00> : vector<8xf32>
    %38 = vector.multi_reduction <add>, %35, %cst_22 [1] : vector<8x32xf32> to vector<8xf32>
    %39 = vector.shape_cast %38 : vector<8xf32> to vector<8x1xf32>
    %cst_23 = arith.constant 3.200000e+01 : f32
    %40 = vector.broadcast %cst_23 : f32 to vector<8x1xf32>
    %41 = arith.divf %39, %40 : vector<8x1xf32>
    %42 = vector.broadcast %41 : vector<8x1xf32> to vector<8x32xf32>
    %43 = arith.subf %35, %42 : vector<8x32xf32>
    %44 = arith.mulf %43, %43 : vector<8x32xf32>
    %cst_24 = arith.constant dense<0.000000e+00> : vector<8xf32>
    %45 = vector.multi_reduction <add>, %44, %cst_24 [1] : vector<8x32xf32> to vector<8xf32>
    %46 = vector.shape_cast %45 : vector<8xf32> to vector<8x1xf32>
    %cst_25 = arith.constant 3.200000e+01 : f32
    %47 = vector.broadcast %cst_25 : f32 to vector<8x1xf32>
    %48 = arith.divf %46, %47 : vector<8x1xf32>
    %49 = vector.broadcast %41 : vector<8x1xf32> to vector<8x32xf32>
    %50 = arith.subf %35, %49 : vector<8x32xf32>
    %cst_26 = arith.constant 9.99999974E-6 : f32
    %51 = vector.broadcast %cst_26 : f32 to vector<8x1xf32>
    %52 = arith.addf %48, %51 : vector<8x1xf32>
    %53 = math.rsqrt %52 : vector<8x1xf32>
    %54 = vector.broadcast %53 : vector<8x1xf32> to vector<8x32xf32>
    %55 = arith.mulf %50, %54 : vector<8x32xf32>
    %56 = vector.broadcast %36 : vector<1x32xf32> to vector<8x32xf32>
    %57 = arith.mulf %55, %56 : vector<8x32xf32>
    %58 = vector.broadcast %37 : vector<1x32xf32> to vector<8x32xf32>
    %59 = arith.addf %57, %58 : vector<8x32xf32>
    %c0_27 = arith.constant 0 : index
    %c0_28 = arith.constant 0 : index
    %60 = vector.load %arg5[%c0_27, %c0_28] : memref<32x64xf32, #tpu.memory_space<vmem>>, vector<32x64xf32>
    %cst_29 = arith.constant dense<0.000000e+00> : vector<8x64xf32>
    %61 = tpu.matmul %59, %60, %cst_29 {dimension_numbers = #tpu.dot_dimension_numbers<[1], [0], [0], [1], [0, 0, 1, 1], [], []>} : vector<8x32xf32>, vector<32x64xf32>, vector<8x64xf32> -> vector<8x64xf32>
    %c0_30 = arith.constant 0 : index
    %c0_31 = arith.constant 0 : index
    %62 = vector.load %arg6[%c0_30, %c0_31] : memref<1x64xf32, #tpu.memory_space<vmem>>, vector<1x64xf32>
    %63 = vector.broadcast %62 : vector<1x64xf32> to vector<8x64xf32>
    %64 = arith.addf %61, %63 : vector<8x64xf32>
    %cst_32 = arith.constant 0.000000e+00 : f32
    %65 = vector.broadcast %cst_32 : f32 to vector<8x64xf32>
    %66 = arith.maximumf %64, %65 : vector<8x64xf32>
    %c0_33 = arith.constant 0 : index
    %c0_34 = arith.constant 0 : index
    %67 = vector.load %arg7[%c0_33, %c0_34] : memref<64x32xf32, #tpu.memory_space<vmem>>, vector<64x32xf32>
    %cst_35 = arith.constant dense<0.000000e+00> : vector<8x32xf32>
    %68 = tpu.matmul %66, %67, %cst_35 {dimension_numbers = #tpu.dot_dimension_numbers<[1], [0], [0], [1], [0, 0, 1, 1], [], []>} : vector<8x64xf32>, vector<64x32xf32>, vector<8x32xf32> -> vector<8x32xf32>
    %c3 = arith.constant 3 : index
    %c0_36 = arith.constant 0 : index
    %69 = vector.load %arg8[%c3, %c0_36] : memref<6x32xf32, #tpu.memory_space<vmem>>, vector<1x32xf32>
    %70 = vector.broadcast %69 : vector<1x32xf32> to vector<8x32xf32>
    %71 = arith.addf %68, %70 : vector<8x32xf32>
    %72 = arith.addf %59, %71 : vector<8x32xf32>
    %c4 = arith.constant 4 : index
    %c0_37 = arith.constant 0 : index
    %73 = vector.load %arg8[%c4, %c0_37] : memref<6x32xf32, #tpu.memory_space<vmem>>, vector<1x32xf32>
    %c5 = arith.constant 5 : index
    %c0_38 = arith.constant 0 : index
    %74 = vector.load %arg8[%c5, %c0_38] : memref<6x32xf32, #tpu.memory_space<vmem>>, vector<1x32xf32>
    %cst_39 = arith.constant dense<0.000000e+00> : vector<8xf32>
    %75 = vector.multi_reduction <add>, %72, %cst_39 [1] : vector<8x32xf32> to vector<8xf32>
    %76 = vector.shape_cast %75 : vector<8xf32> to vector<8x1xf32>
    %cst_40 = arith.constant 3.200000e+01 : f32
    %77 = vector.broadcast %cst_40 : f32 to vector<8x1xf32>
    %78 = arith.divf %76, %77 : vector<8x1xf32>
    %79 = vector.broadcast %78 : vector<8x1xf32> to vector<8x32xf32>
    %80 = arith.subf %72, %79 : vector<8x32xf32>
    %81 = arith.mulf %80, %80 : vector<8x32xf32>
    %cst_41 = arith.constant dense<0.000000e+00> : vector<8xf32>
    %82 = vector.multi_reduction <add>, %81, %cst_41 [1] : vector<8x32xf32> to vector<8xf32>
    %83 = vector.shape_cast %82 : vector<8xf32> to vector<8x1xf32>
    %cst_42 = arith.constant 3.200000e+01 : f32
    %84 = vector.broadcast %cst_42 : f32 to vector<8x1xf32>
    %85 = arith.divf %83, %84 : vector<8x1xf32>
    %86 = vector.broadcast %78 : vector<8x1xf32> to vector<8x32xf32>
    %87 = arith.subf %72, %86 : vector<8x32xf32>
    %cst_43 = arith.constant 9.99999974E-6 : f32
    %88 = vector.broadcast %cst_43 : f32 to vector<8x1xf32>
    %89 = arith.addf %85, %88 : vector<8x1xf32>
    %90 = math.rsqrt %89 : vector<8x1xf32>
    %91 = vector.broadcast %90 : vector<8x1xf32> to vector<8x32xf32>
    %92 = arith.mulf %87, %91 : vector<8x32xf32>
    %93 = vector.broadcast %73 : vector<1x32xf32> to vector<8x32xf32>
    %94 = arith.mulf %92, %93 : vector<8x32xf32>
    %95 = vector.broadcast %74 : vector<1x32xf32> to vector<8x32xf32>
    %96 = arith.addf %94, %95 : vector<8x32xf32>
    %c0_44 = arith.constant 0 : index
    %c0_45 = arith.constant 0 : index
    %c0_46 = arith.constant 0 : index
    %97 = vector.load %arg11[%c0_44, %c0_45, %c0_46] : memref<1x8x32xf32, #tpu.memory_space<vmem>>, vector<1x8x32xf32>
    %98 = vector.shape_cast %97 : vector<1x8x32xf32> to vector<8x32xf32>
    %99 = vector.shape_cast %96 : vector<8x32xf32> to vector<1x8x32xf32>
    tpu.vector_store %arg11[%c0_44, %c0_45, %c0_46], %99 {strides = array<i32>} : memref<1x8x32xf32, #tpu.memory_space<vmem>>, vector<1x8x32xf32>,
    return
  }
  func.func @transform_0(%arg0: i32) -> (i32, i32, i32) {
    %c0_i32 = arith.constant 0 : i32
    %c0_i32_0 = arith.constant 0 : i32
    %c0_i32_1 = arith.constant 0 : i32
    return %arg0, %c0_i32, %c0_i32_0 : i32, i32, i32
  }
  func.func @transform_1(%arg0: i32) -> (i32, i32) {
    %c0_i32 = arith.constant 0 : i32
    %c0_i32_0 = arith.constant 0 : i32
    %c0_i32_1 = arith.constant 0 : i32
    return %c0_i32, %c0_i32_0 : i32, i32
  }
  func.func @transform_2(%arg0: i32) -> (i32, i32) {
    %c0_i32 = arith.constant 0 : i32
    %c0_i32_0 = arith.constant 0 : i32
    %c0_i32_1 = arith.constant 0 : i32
    return %c0_i32, %c0_i32_0 : i32, i32
  }
  func.func @transform_3(%arg0: i32) -> (i32, i32) {
    %c0_i32 = arith.constant 0 : i32
    %c0_i32_0 = arith.constant 0 : i32
    %c0_i32_1 = arith.constant 0 : i32
    return %c0_i32, %c0_i32_0 : i32, i32
  }
  func.func @transform_4(%arg0: i32) -> (i32, i32) {
    %c0_i32 = arith.constant 0 : i32
    %c0_i32_0 = arith.constant 0 : i32
    %c0_i32_1 = arith.constant 0 : i32
    return %c0_i32, %c0_i32_0 : i32, i32
  }
  func.func @transform_5(%arg0: i32) -> (i32, i32) {
    %c0_i32 = arith.constant 0 : i32
    %c0_i32_0 = arith.constant 0 : i32
    %c0_i32_1 = arith.constant 0 : i32
    return %c0_i32, %c0_i32_0 : i32, i32
  }
  func.func @transform_6(%arg0: i32) -> (i32, i32) {
    %c0_i32 = arith.constant 0 : i32
    %c0_i32_0 = arith.constant 0 : i32
    %c0_i32_1 = arith.constant 0 : i32
    return %c0_i32, %c0_i32_0 : i32, i32
  }
  func.func @transform_7(%arg0: i32) -> (i32, i32) {
    %c0_i32 = arith.constant 0 : i32
    %c0_i32_0 = arith.constant 0 : i32
    %c0_i32_1 = arith.constant 0 : i32
    return %c0_i32, %c0_i32_0 : i32, i32
  }
  func.func @transform_8(%arg0: i32) -> (i32, i32) {
    %c0_i32 = arith.constant 0 : i32
    %c0_i32_0 = arith.constant 0 : i32
    %c0_i32_1 = arith.constant 0 : i32
    return %c0_i32, %c0_i32_0 : i32, i32
  }
  func.func @transform_9(%arg0: i32) -> (i32, i32) {
    %c0_i32 = arith.constant 0 : i32
    %c0_i32_0 = arith.constant 0 : i32
    %c0_i32_1 = arith.constant 0 : i32
    return %c0_i32, %c0_i32_0 : i32, i32
  }
  func.func @transform_10(%arg0: i32) -> (i32, i32, i32) {
    %c0_i32 = arith.constant 0 : i32
    %c0_i32_0 = arith.constant 0 : i32
    %c0_i32_1 = arith.constant 0 : i32
    return %arg0, %c0_i32, %c0_i32_0 : i32, i32, i32
  }
}

</mosaic_0001>

<bundles_post_ra>
// kernel: tpu_custom_call.1
= control target key start
LH: loop header
LB: loop body
LE: loop exit
PB: predicated region body
PF: predicated region fallthrough
CT: control target
= control target key end

     0   :  { %s2098_s0 = inlined_call_operand.hbm [shape: f32[2,8,32], index: 0, kind: input, shape index: {}]   ;;  %s2099_s1 = inlined_call_operand.vmem [shape: f32[32,96], index: 1, kind: input, shape index: {}]   ;;  %s2100_s2 = inlined_call_operand.vmem [shape: f32[1,96], index: 2, kind: input, shape index: {}]   ;;  %s2101_s3 = inlined_call_operand.vmem [shape: f32[32,32], index: 3, kind: input, shape index: {}]   ;;  %s2102_s4 = inlined_call_operand.vmem [shape: f32[32,64], index: 4, kind: input, shape index: {}]   ;;  %s2103_s5 = inlined_call_operand.vmem [shape: f32[1,64], index: 5, kind: input, shape index: {}]   ;;  %s2104_s6 = inlined_call_operand.vmem [shape: f32[64,32], index: 6, kind: input, shape index: {}]   ;;  %s2105_s7 = inlined_call_operand.hbm [shape: f32[6,32], index: 7, kind: input, shape index: {}]   ;;  %s2106_s8 = inlined_call_operand.hbm [shape: f32[32,32], index: 8, kind: input, shape index: {}]   ;;  %s2107_s9 = inlined_call_operand.vmem [shape: f32[32,32], index: 9, kind: input, shape index: {}]   ;;  %s2108_s10 = inlined_call_operand.hbm [shape: f32[2,8,32], index: 10, kind: output, shape index: {}]  }
   0x1   :  { %2112 = sst [smem:[#allocation12_spill]] %s2105_s7 }
   0x2   :  { %2113 = sst [smem:[#allocation13_spill]] %s2106_s8 }
   0x3   :  { %15 = vsyncpa [#allocation3], 0 }
   0x4   :  { %17 = vsyncpa [#allocation3 + $0x1], 0 }
   0x5   :  { %18 = vsyncpa [#allocation6], 0 }
   0x6   :  { %19 = vsyncpa [#allocation4], 0 }
   0x7   :  { %21 = vsyncpa [#allocation4 + $0x1], 0  ;;  %s1746_s13 = smov 0   ;;  %s1748_s14 = smov 0  }
   0x8   :  { %s1750_s15 = smov 0   ;;  %s1752_s16 = smov 0  }
   0x9 LB: > { %s1767_s17 = sadd.s32 4294967295, %s1677_s16   ;;  %s1209_s18 = sadd.s32 4294967294, %s1677_s16   ;;  %s1677_s16 = sphi %s1752_s16, %s2132_s16   ;;  %s1673_s15 = sphi %s1750_s15, %s2131_s15   ;;  %s1669_s14 = sphi %s1748_s14, %s2130_s14   ;;  %s1665_s13 = sphi %s1746_s13, %s2129_s13  }
   0xa   : > { %p47_p0 = scmp.ne.s32.totalorder %s1669_s14, %s1665_s13  ;;  %p2109_p1 = scmp.eq.s32.totalorder %s1767_s17, 0 }
   0xb   : > { %p266_p3 = scmp.eq.s32.totalorder %s1209_s18, 1  ;;  %p1210_p5 = scmp.ge.s32.totalorder %s1677_s16, 1 }
   0xc   : > { %p1776_p4 = por %p2109_p1, %p47_p0  ;;  %p273_p7 = scmp.lt.s32.totalorder %s1677_s16, 3 }
   0xd   : > { %p1781_p6 = por %p266_p3, %p47_p0  ;;  %s1679_s22 = smov [#allocation5]  }
   0xe   : > { %s2114_s19 = scalar_select %p1776_p4, 1, 0 }
   0xf   : > { %s2115_s20 = scalar_select %p1781_p6, 1, 0 }
  0x10   : > { %p1786_p8 = pnand %p1210_p5, %p273_p7  ;;  %s304_s23 = sshll.u32 %s1679_s22, 4  ;;  %s305_s23 = int_to_ptr.vmem [resolvable:$true] %s304_s23 }
  0x11   : > { %s1680_s24 = smov [#allocation7]   ;;  %s2118_s7 = sld [smem:[#allocation12_spill]] }
  0x12   : > { %s2116_s21 = scalar_select %p1786_p8, 1, 0 }
  0x13   : > { %p1430_p10 = pneg %p1786_p8  ;;  %s314_s25 = sshll.u32 %s1680_s24, 4  ;;  %s1799_s25 = int_to_ptr.vmem [resolvable:$true] %s314_s25 }
  0x15   : > { %p1795_p11 = pnand %p1430_p10, %p2109_p1 }
  0x17   : > { %s1521_s29 = scalar_lea.hbm %s2118_s7, 128  ;;  %p1523_p13 = pneg %p1795_p11 }
  0x18   : > { %p1522_p12 = scmp.ne.s32.totalorder %s2118_s7, %s1521_s29  ;;  %p1528_p5 = scmp.lt.u32.totalorder %s1521_s29, %s2118_s7 }
  0x1a   : > { %p1524_p0 = pnand %p1523_p13, %p1522_p12 }
  0x1c   : > { %p1525_p3 = pneg %p1524_p0 }
  0x1e   : > { %p1530_p7 = pnand %p1528_p5, %p1525_p3 }
  0x20   : > { %1533 = shalt.err (!%p1530_p7)
}
  0x21   : > { %s1534_s22 = scalar_lea.vmem %s305_s23, 128  ;;  %p1542_p2 = scmp.lt.s32.totalorder %s305_s23, %s305_s23 }
  0x22   : > { %p1535_p10 = scmp.ne.s32.totalorder %s305_s23, %s1534_s22  ;;  %p1543_p6 = scmp.lt.s32.totalorder %s1534_s22, %s1534_s22 }
  0x24   : > { %p1537_p9 = pnand %p1535_p10, %p1523_p13  ;;  %p1544_p4 = por %p1543_p6, %p1542_p2 }
  0x26   : > { %p1538_p1 = pneg %p1537_p9 }
  0x28   : > { %p1545_p8 = pnand %p1544_p4, %p1538_p1 }
  0x2a   : > { %1548 = shalt.err (!%p1545_p8)
}
  0x2b   : > { %1433 = dma.hbm_to_vmem [thread:$0]  (!%p1795_p11), %s2118_s7, 128, %s305_s23, [#allocation6]  }
  0x2c   : > { %s2119_s8 = sld [smem:[#allocation13_spill]] }
  0x32   : > { %s1549_s30 = scalar_lea.hbm %s2119_s8, 512 }
  0x33   : > { %p1550_p9 = scmp.ne.s32.totalorder %s2119_s8, %s1549_s30  ;;  %p1556_p4 = scmp.lt.u32.totalorder %s1549_s30, %s2119_s8 }
  0x35   : > { %p1552_p2 = pnand %p1550_p9, %p1523_p13 }
  0x37   : > { %p1553_p1 = pneg %p1552_p2 }
  0x39   : > { %p1558_p6 = pnand %p1556_p4, %p1553_p1 }
  0x3b   : > { %1561 = shalt.err (!%p1558_p6)
}
  0x3c   : > { %s1562_s23 = scalar_lea.vmem %s1799_s25, 512  ;;  %p1570_p3 = scmp.lt.s32.totalorder %s1799_s25, %s1799_s25 }
  0x3d   : > { %p1563_p8 = scmp.ne.s32.totalorder %s1799_s25, %s1562_s23  ;;  %p1571_p5 = scmp.lt.s32.totalorder %s1562_s23, %s1562_s23 }
  0x3f   : > { %p1565_p12 = pnand %p1563_p8, %p1523_p13  ;;  %p1572_p7 = por %p1571_p5, %p1570_p3 }
  0x41   : > { %p1566_p0 = pneg %p1565_p12 }
  0x43   : > { %p1573_p10 = pnand %p1572_p7, %p1566_p0 }
  0x45   : > { %1576 = shalt.err (!%p1573_p10)
}
  0x46   : > { %s1681_s24 = smov 128   ;;  %s1682_s27 = smov 8  }
  0x47   : > { %1436 = dma.hbm_to_vmem [thread:$0]  (!%p1795_p11), %s2119_s8, 512, %s1799_s25, [#allocation6], %s1681_s24, %s1681_s24, %s1682_s27  }
  0x48   : > { %s1849_s30 = sadd.s32 1, %s1677_s16   ;;  %s34_s11 = sadd.s32 1, %s1673_s15 }
  0x49   : > { %s31_s12 = ssub.s32 %s1677_s16, %s1849_s30  ;;  %p41_p13 = scmp.ne.s32.totalorder %s1673_s15, %s1669_s14 }
  0x4a   : > { %p32_p9 = scmp.eq.s32.totalorder %s31_s12, 0  ;;  %p42_p2 = scmp.eq.s32.totalorder %s1677_s16, 0 }
  0x4b   : > { %p2120_p1 = scmp.eq.s32.totalorder %s1767_s17, 1  ;;  %p1447_p6 = scmp.lt.s32.totalorder %s1677_s16, 2 }
  0x4c   : > { %s1865_s22 = scalar_select %p32_p9, %s1673_s15, %s34_s11  }
  0x4d   : > { %p1859_p4 = por %p2120_p1, %p41_p13  ;;  %p43_p8 = por %p42_p2, %p41_p13 }
  0x4e   : > { %s331_s26 = sand.u32 1, %s1673_s15   ;;  %s1215_s25 = sshll.u32 %s1677_s16, 7 }
  0x4f   : > { %s1214_s23 = sshll.u32 %s331_s26, 3  ;;  %s1872_s28 = scalar_lea.hbm %s2098_s0, %s1215_s25 }
  0x50   : > { %s335_s29 = scalar_lea.vmem [#allocation2], %s1214_s23  ;;  %p1876_p11 = pnand %p1447_p6, %p43_p8 }
  0x51   : > { %s342_s12 = sshll.u32 %s335_s29, 4  ;;  %s332_s7 = scalar_lea.sflag [#allocation3], %s331_s26  ;;  %s1874_s12 = int_to_ptr.vmem [resolvable:$true] %s342_s12 }
  0x52   : > { %s1577_s8 = scalar_lea.hbm %s1872_s28, 128  ;;  %p1579_p0 = pneg %p1876_p11 }
  0x53   : > { %p1578_p12 = scmp.ne.s32.totalorder %s1872_s28, %s1577_s8  ;;  %s1582_s24 = scalar_lea.hbm %s2098_s0, 256 }
  0x54   : > { %p1583_p7 = scmp.lt.u32.totalorder %s1872_s28, %s2098_s0  ;;  %p1584_p10 = scmp.lt.u32.totalorder %s1582_s24, %s1577_s8 }
  0x55   : > { %p1580_p3 = pnand %p1579_p0, %p1578_p12  ;;  %p1586_p9 = scmp.lt.u32.totalorder %s1577_s8, %s1872_s28 }
  0x56   : > { %p1585_p13 = por %p1584_p10, %p1583_p7 }
  0x57   : > { %p1581_p5 = pneg %p1580_p3 }
  0x58   : > { %p1587_p2 = por %p1586_p9, %p1585_p13 }
  0x5a   : > { %p1588_p1 = pnand %p1587_p2, %p1581_p5 }
  0x5c   : > { %1591 = shalt.err (!%p1588_p1)
}
  0x5d   : > { %s1592_s26 = scalar_lea.vmem %s1874_s12, 128  ;;  %s1683_s25 = smov [#allocation2]  }
  0x5e   : > { %p1593_p6 = scmp.ne.s32.totalorder %s1874_s12, %s1592_s26  ;;  %s1597_s23 = sshll.u32 %s1683_s25, 4  ;;  %s1598_s23 = int_to_ptr.vmem [resolvable:$false] %s1597_s23 }
  0x5f   : > { %s1599_s27 = scalar_lea.vmem %s1598_s23, 256  ;;  %p1600_p3 = scmp.lt.s32.totalorder %s1874_s12, %s1598_s23 }
  0x60   : > { %p1595_p8 = pnand %p1593_p6, %p1579_p0  ;;  %p1601_p7 = scmp.lt.s32.totalorder %s1599_s27, %s1592_s26 }
  0x62   : > { %p1596_p12 = pneg %p1595_p8  ;;  %p1602_p10 = por %p1601_p7, %p1600_p3 }
  0x64   : > { %p1603_p13 = pnand %p1602_p10, %p1596_p12 }
  0x66   : > { %1606 = shalt.err (!%p1603_p13)
}
  0x67   : > { %1440 = dma.hbm_to_vmem [thread:$0]  (!%p1876_p11), %s1872_s28, 128, %s1874_s12, %s332_s7  }
  0x68   : > { %p2123_p5 = scmp.ne.s32.totalorder %s2116_s21, 0 }
  0x69   : > { %s1908_s8 = sand.u32 (!%p2123_p5), 1, %s1669_s14   ;;  %p2124_p0 = scmp.ne.s32.totalorder (!%p2123_p5), %s2114_s19, 0 }
  0x6a   : > { %351 = sbr.rel (%p2123_p5) target bundleno = 2580 (0xa14), region = 60  ;;  %s1217_s24 = sshll.u32 (!%p2123_p5), %s1908_s8, 3 }
  0x6b   : > { %s354_s29 = scalar_lea.sflag (!%p2123_p5), [#allocation3], %s1908_s8  ;;  %s357_s26 = scalar_lea.vmem (!%p2123_p5), [#allocation2], %s1217_s24 }
  0x71   : > { %1652 = dma.done.wait (%p2124_p0), %s354_s29, 128  }
  0x72   : > { %1654 = vsyncadd (%p2124_p0), %s354_s29, 4294967168  ;;  %p2125_p11 = scmp.eq.s32.totalorder %s1767_s17, 0 }
  0x74   : > { %1656 = dma.done.wait (%p2125_p11), [#allocation6], 640   ;;  %p2126_p9 = pmov %p2125_p11 }
  0x75   : > { %v1684_v0 = vmov 0.0|0.0   ;;  %vm1685_vm0 = vmmov 0   ;;  %v1686_v1 = vmov 0.0   ;;  %v403_v2 = vld [vmem:[%s2099_s1] sm:$0xff]  ;;  %v404_v3 = vld [vmem:[%s2099_s1 + $0x8] sm:$0xff]  ;;  %v405_v4 = vld [vmem:[%s2099_s1 + $0x10] sm:$0xff] }
  0x76   : > { %1658 = vsyncadd (%p2126_p9), [#allocation6], 4294966656  ;;  %1368 = vmatprep.subr.bf16.mxu0 %v1684_v0  ;;  %1291 = vmatprep.mubr.msk.f32.mxu0 %vm1685_vm0, %v1686_v1  ;;  %v1369_v5 = vpack.c.bf16 %v404_v3, %v403_v2  ;;  %v406_v6 = vld [vmem:[%s2099_s1 + $0x18] sm:$0xff]  ;;  %v490_v7 = vld [vmem:[#allocation7 + $0x10] sm:$0xff]  ;;  %s1687_s27 = smov 32   ;;  %vm414_vm1 = vcmask 261120  }
  0x77   : > { %1374 = vmatprep.subr.bf16.mxu1 %v1684_v0  ;;  %1302 = vmatprep.mubr.msk.f32.mxu1 %vm1685_vm0, %v1686_v1  ;;  %v488_v8 = vld [vmem:[#allocation7] sm:$0xff]  ;;  %v1372_v9 = vpack.c.bf16 %v406_v6, %v405_v4  ;;  %v491_v10 = vld [vmem:[#allocation7 + $0x18] sm:$0xff]  ;;  %v489_v11 = vld [vmem:[#allocation7 + $0x8] sm:$0xff]  ;;  %s1689_s19 = smov 64   ;;  %vm1005_vm3 = vcmask 523264   ;;  %s1107_s25 = scalar_lea.sflag [#allocation4], %s1908_s8 }
  0x78   : > { %500 = vrot.lane.b32.xlu1 %v490_v7, %s1687_s27  ;;  %1370 = vmatpush3.bf16.msra.mxu0 %v1369_v5  ;;  %v1941_v12 = vld [vmem:[%s357_s26] sm:$0xff]  ;;  %s1688_s26 = smov 96   ;;  %vm1376_vm2 = vmpackc.low %vm414_vm1, %vm414_vm1  ;;  %v629_v50 = vld [vmem:[%s2107_s9 + $0x10] sm:$0xff] }
  0x79   : > { %496 = vrot.lane.b32.xlu0 %v488_v8, %s1687_s27  ;;  %1371 = vmatprep.subr.bf16.mxu0 %v1684_v0  ;;  %v1221_v15 = vld [vmem:[%s2100_s2] ss:$0 sm:$0xff]  ;;  %v628_v49 = vld [vmem:[%s2107_s9 + $0x8] sm:$0xff]  ;;  %v630_v52 = vld [vmem:[%s2107_s9 + $0x18] sm:$0xff] }
  0x7a   : > { %v627_v48 = vld [vmem:[%s2107_s9] sm:$0xff]  ;;  %v1386_v53 = vpack.c.bf16 %v630_v52, %v629_v50  ;;  %v799_v5 = vld [vmem:[%s2101_s3 + $0x8] sm:$0xff]  ;;  %v800_v6 = vld [vmem:[%s2101_s3 + $0x10] sm:$0xff] }
  0x7b   : > { %v1383_v51 = vpack.c.bf16 %v628_v49, %v627_v48  ;;  %v798_v4 = vld [vmem:[%s2101_s3] sm:$0xff]  ;;  %v1232_v48 = vld [vmem:[#allocation5 + $0x1] ss:$0 sm:$0xff]  ;;  %v1233_v50 = vld [vmem:[#allocation5 + $0x2] ss:$0 sm:$0xff] }
  0x7c   : > { %502 = vrot.lane.b32.xlu1 %v491_v10, %s1687_s27  ;;  %1373 = vmatpush3.bf16.msra.mxu0 %v1372_v9 }
  0x7d   : > { %498 = vrot.lane.b32.xlu0 %v489_v11, %s1687_s27  ;;  %1382 = vmatprep.subr.bf16.mxu0 %v1684_v0 }
  0x7f   : > { %1292 = vmatmul.mubr.msk.f32.vlgmr.msra.gmra.mrb[0].mxu0 %vm414_vm1, %v1941_v12 }
  0x80   : > { %1313 = vmatprep.mubr.msk.f32.mxu0 %vm1685_vm0, %v1686_v1  ;;  %1384 = vmatpush3.bf16.msra.mxu0 %v1383_v51 }
  0x81   : > { %1385 = vmatprep.subr.bf16.mxu0 %v1684_v0 }
  0x84   : > { %1387 = vmatpush3.bf16.msra.mxu0 %v1386_v53  ;;  %v998_v53 = vld [vmem:[%s2104_s6 + $0x30] sm:$0xff] }
  0x85   : > { %1388 = vmatprep.subr.bf16.mxu0 %v1684_v0 }
  0xea   : > { %v501_v13 = vpop.permute.xlu1 %500 }
  0xeb   : > { %v497_v14 = vpop.permute.xlu0 %496 }
  0xee   : > { %v503_v16 = vpop.permute.xlu1 %502 }
  0xef   : > { %v499_v18 = vpop.permute.xlu0 %498 }
 0x152   : > { %v484_v17 = vpop.f32.mrb[0].mxu0 }
 0x153   : > { %v485_v19 = vadd.f32 %v1221_v15, %v484_v17  ;;  %v1293_v20 = vpop.f32.mrb[1].mxu0 }
 0x154   : > { %v1230_v20 = vld [vmem:[#allocation5] ss:$0 sm:$0xff] }
 0x155   : > { %v510_v21 = vmul.f32 %v501_v13, %v485_v19  ;;  %v511_v22 = vmul.f32 %v503_v16, %v485_v19  ;;  %v508_v23 = vmul.f32 %v497_v14, %v485_v19  ;;  %v509_v24 = vmul.f32 %v499_v18, %v485_v19 }
 0x157   : > { %v1498_v25 = vpack.i.bf16 %v511_v22, %v510_v21  ;;  %v1493_v26 = vpack.i.bf16 %v509_v24, %v508_v23 }
 0x159   : > { %1499 = vrot.lane.b32.xlu1 %v1498_v25, %s1688_s26  ;;  %1494 = vrot.lane.b32.xlu0 %v1493_v26, %s1688_s26  ;;  %s1241_s26 = sshll.u32 %s1767_s17, 7  ;;  %s1690_s17 = smov [#allocation8]  }
 0x15a   : > { %s2053_s11 = scalar_lea.hbm %s2108_s10, %s1241_s26 }
 0x15d   : > { %512 = vrot.lane.b32.xlu1 %v488_v8, %s1689_s19  ;;  %v801_v8 = vld [vmem:[%s2101_s3 + $0x18] sm:$0xff] }
 0x15e   : > { %v1398_v9 = vpack.c.bf16 %v801_v8, %v800_v6 }
 0x161   : > { %514 = vrot.lane.b32.xlu1 %v489_v11, %s1689_s19 }
 0x165   : > { %516 = vrot.lane.b32.xlu1 %v490_v7, %s1689_s19  ;;  %v1395_v7 = vpack.c.bf16 %v799_v5, %v798_v4 }
 0x169   : > { %518 = vrot.lane.b32.xlu1 %v491_v10, %s1689_s19 }
 0x1cb   : > { %v1500_v27 = vpop.permute.xlu1 %1499  ;;  %v1495_v28 = vpop.permute.xlu0 %1494 }
 0x1cc   : > { %v1497_v29 = vunpack.i.h.bf16 %v1495_v28  ;;  %v1496_v30 = vunpack.i.l.bf16 %v1495_v28  ;;  %v1502_v33 = vunpack.i.h.bf16 %v1500_v27  ;;  %v1501_v34 = vunpack.i.l.bf16 %v1500_v27 }
 0x1ce   : > { %v1375_v31 = vpack.c.bf16 %v1497_v29, %v1496_v30  ;;  %v1379_v38 = vpack.c.bf16 %v1502_v33, %v1501_v34  ;;  %v910_v33 = vld [vmem:[%s2102_s4 + $0x18] sm:$0xff] }
 0x1cf   : > { %v513_v32 = vpop.permute.xlu1 %512 }
 0x1d0   : > { %1377 = vmatpush3.bf16.xpose.msk.msra.mxu1 %vm1376_vm2, %v1375_v31  ;;  %v524_v36 = vmul.f32 %v513_v32, %v485_v19  ;;  %v908_v31 = vld [vmem:[%s2102_s4 + $0x8] sm:$0xff] }
 0x1d1   : > { %1378 = vmatprep.subr.bf16.mxu1 %v1684_v0 }
 0x1d3   : > { %v515_v35 = vpop.permute.xlu1 %514 }
 0x1d4   : > { %v525_v37 = vmul.f32 %v515_v35, %v485_v19  ;;  %v992_v35 = vld [vmem:[%s2104_s6] sm:$0xff] }
 0x1d6   : > { %v1503_v39 = vpack.i.bf16 %v525_v37, %v524_v36  ;;  %v993_v36 = vld [vmem:[%s2104_s6 + $0x8] sm:$0xff]  ;;  %v994_v37 = vld [vmem:[%s2104_s6 + $0x10] sm:$0xff] }
 0x1d7   : > { %v517_v40 = vpop.permute.xlu1 %516 }
 0x1d8   : > { %1504 = vrot.lane.b32.xlu1 %v1503_v39, %s1689_s19  ;;  %1381 = vmatpush3.bf16.xpose.msk.msra.mxu1 %vm1376_vm2, %v1379_v38  ;;  %v526_v42 = vmul.f32 %v517_v40, %v485_v19  ;;  %v1407_v38 = vpack.c.bf16 %v993_v36, %v992_v35  ;;  %v995_v39 = vld [vmem:[%s2104_s6 + $0x18] sm:$0xff] }
 0x1d9   : > { %1394 = vmatprep.subr.bf16.mxu1 %v1684_v0  ;;  %v1410_v40 = vpack.c.bf16 %v995_v39, %v994_v37 }
 0x1db   : > { %v519_v41 = vpop.permute.xlu1 %518 }
 0x1dc   : > { %v527_v43 = vmul.f32 %v519_v41, %v485_v19  ;;  %v996_v41 = vld [vmem:[%s2104_s6 + $0x20] sm:$0xff] }
 0x1de   : > { %v1508_v44 = vpack.i.bf16 %v527_v43, %v526_v42  ;;  %v997_v42 = vld [vmem:[%s2104_s6 + $0x28] sm:$0xff] }
 0x1df   : > { %1303 = vmatmul.mubr.msk.f32.vlgmr.msra.gmra.mrb[0].mxu1 %vm414_vm1, %v485_v19  ;;  %v1413_v43 = vpack.c.bf16 %v997_v42, %v996_v41 }
 0x1e0   : > { %1509 = vrot.lane.b32.xlu1 %v1508_v44, %s1689_s19  ;;  %1335 = vmatprep.mubr.msk.f32.mxu1 %vm1685_vm0, %v1686_v1  ;;  %s401_s19 = scalar_lea.vmem [#allocation8], %s1217_s24  ;;  %s1611_s24 = sshll.u32 %s1690_s17, 4  ;;  %s1612_s24 = int_to_ptr.vmem [resolvable:$false] %s1611_s24 }
 0x1e1   : > { %1396 = vmatpush3.bf16.msra.mxu1 %v1395_v7  ;;  %s1120_s21 = sshll.u32 %s401_s19, 4  ;;  %s1613_s27 = scalar_lea.vmem %s1612_s24, 256  ;;  %s2055_s21 = int_to_ptr.vmem [resolvable:$true] %s1120_s21 }
 0x1e2   : > { %1397 = vmatprep.subr.bf16.mxu1 %v1684_v0  ;;  %s1607_s23 = scalar_lea.vmem %s2055_s21, 128  ;;  %p1614_p8 = scmp.lt.s32.totalorder %s2055_s21, %s1612_s24 }
 0x1e3   : > { %p1608_p2 = scmp.ne.s32.totalorder %s2055_s21, %s1607_s23  ;;  %p1615_p12 = scmp.lt.s32.totalorder %s1613_s27, %s1607_s23 }
 0x1e5   : > { %1399 = vmatpush3.bf16.msra.mxu1 %v1398_v9  ;;  %p1609_p1 = pnand %p1608_p2, %p1859_p4  ;;  %p1616_p3 = por %p1615_p12, %p1614_p8 }
 0x1e6   : > { %1406 = vmatprep.subr.bf16.mxu1 %v1684_v0 }
 0x1e7   : > { %p1610_p6 = pneg %p1609_p1 }
 0x1e9   : > { %p1617_p7 = pnand %p1616_p3, %p1610_p6 }
 0x24a   : > { %v1505_v57 = vpop.permute.xlu1 %1504 }
 0x24b   : > { %v1507_v58 = vunpack.i.h.bf16 %v1505_v57  ;;  %v1506_v59 = vunpack.i.l.bf16 %v1505_v57 }
 0x24d   : > { %v1389_v62 = vpack.c.bf16 %v1507_v58, %v1506_v59 }
 0x252   : > { %v1510_v60 = vpop.permute.xlu1 %1509 }
 0x253   : > { %v1512_v63 = vunpack.i.h.bf16 %v1510_v60  ;;  %v1511_v2 = vunpack.i.l.bf16 %v1510_v60  ;;  %v1236_v60 = vld [vmem:[#allocation5 + $0x3] ss:$0 sm:$0xff] }
 0x255   : > { %v1392_v3 = vpack.c.bf16 %v1512_v63, %v1511_v2 }
 0x2b2   : > { %v617_v45 = vpop.f32.mrb[0].mxu1 }
 0x2b3   : > { %v1304_v46 = vpop.f32.mrb[1].mxu1  ;;  %v621_v47 = vsel %vm414_vm1, %v617_v45, -inf }
 0x2b4   : > { %622 = vmax.xlane.f32.xlu0 %v621_v47 }
 0x341   : > { %v623_v54 = vpop.xlane.xlu0 %622 }
 0x342   : > { %v624_v55 = vsub.f32 %v617_v45, %v623_v54 }
 0x344   : > { %v625_v56 = vmul.f32 1.442695, %v624_v55  ;;  %v1234_v55 = vld [vmem:[%s2103_s5] ss:$0 sm:$0xff] }
 0x346   : > { %1513 = vpow2.f32 %v625_v56 }
 0x350   : > { %v1514_v61 = vpop.eup %1513 }
 0x351   : > { %1314 = vmatmul.mubr.msk.f32.vlgmr.msra.gmra.mrb[2].mxu0 %vm414_vm1, %v1514_v61 }
 0x352   : > { %1390 = vmatpush3.bf16.msra.mxu0 %v1389_v62  ;;  %1324 = vmatprep.mubr.msk.f32.mxu0 %vm1685_vm0, %v1686_v1 }
 0x353   : > { %1391 = vmatprep.subr.bf16.mxu0 %v1684_v0 }
 0x356   : > { %1393 = vmatpush3.bf16.msra.mxu0 %v1392_v3 }
 0x357   : > { %1400 = vmatprep.subr.bf16.mxu0 %v1684_v0 }
 0x424   : > { %v700_v10 = vpop.f32.mrb[2].mxu0 }
 0x425   : > { %1515 = vrcp.f32 %v700_v10  ;;  %v1315_v11 = vpop.f32.mrb[3].mxu0 }
 0x42f   : > { %v1516_v13 = vpop.eup %1515 }
 0x430   : > { %v705_v14 = vmul.f32 %v1516_v13, %v700_v10 }
 0x432   : > { %v706_v15 = vsub.f32 2.0, %v705_v14  ;;  %v1238_v14 = vld [vmem:[#allocation5 + $0x4] ss:$0 sm:$0xff] }
 0x434   : > { %v707_v16 = vmul.f32 %v1516_v13, %v706_v15 }
 0x436   : > { %v708_v17 = vmul.f32 %v1514_v61, %v707_v16  ;;  %v1239_v16 = vld [vmem:[#allocation5 + $0x5] ss:$0 sm:$0xff] }
 0x438   : > { %1325 = vmatmul.mubr.msk.f32.vlgmr.msra.gmra.mrb[4].mxu0 %vm414_vm1, %v708_v17 }
 0x439   : > { %1346 = vmatprep.mubr.msk.f32.mxu0 %vm1685_vm0, %v1686_v1 }
 0x50b   : > { %v794_v18 = vpop.f32.mrb[4].mxu0 }
 0x50c   : > { %v1326_v19 = vpop.f32.mrb[5].mxu0  ;;  %1336 = vmatmul.mubr.msk.f32.vlgmr.msra.gmra.mrb[2].mxu1 %vm414_vm1, %v794_v18 }
 0x50d   : > { %1365 = vmatprep.mubr.msk.f32.mxu1 %vm1685_vm0, %v1686_v1  ;;  %v907_v1 = vld [vmem:[%s2102_s4] sm:$0xff]  ;;  %1408 = vmatpush3.bf16.msra.mxu1 %v1407_v38 }
 0x50e   : > { %v1401_v32 = vpack.c.bf16 %v908_v31, %v907_v1  ;;  %1409 = vmatprep.subr.bf16.mxu1 %v1684_v0 }
 0x510   : > { %1402 = vmatpush3.bf16.msra.mxu0 %v1401_v32 }
 0x511   : > { %1403 = vmatprep.subr.bf16.mxu0 %v1684_v0  ;;  %1411 = vmatpush3.bf16.msra.mxu1 %v1410_v40 }
 0x512   : > { %1412 = vmatprep.subr.bf16.mxu1 %v1684_v0 }
 0x515   : > { %1414 = vmatpush3.bf16.msra.mxu1 %v1413_v43 }
 0x516   : > { %1415 = vmatprep.subr.bf16.mxu1 %v1684_v0  ;;  %v999_v0 = vld [vmem:[%s2104_s6 + $0x38] sm:$0xff] }
 0x517   : > { %v1416_v54 = vpack.c.bf16 %v999_v0, %v998_v53 }
 0x519   : > { %1417 = vmatpush3.bf16.msra.mxu1 %v1416_v54 }
 0x5df   : > { %v876_v21 = vpop.f32.mrb[2].mxu1 }
 0x5e0   : > { %v877_v22 = vadd.f32 %v1230_v20, %v876_v21  ;;  %v1337_v23 = vpop.f32.mrb[3].mxu1 }
 0x5e2   : > { %v880_v24 = vadd.f32 %v877_v22, %v1941_v12  ;;  %v909_v12 = vld [vmem:[%s2102_s4 + $0x10] sm:$0xff] }
 0x5e3   : > { %v1404_v34 = vpack.c.bf16 %v910_v33, %v909_v12 }
 0x5e4   : > { %v883_v25 = vsel %vm414_vm1, %v880_v24, 0.0 }
 0x5e5   : > { %884 = vadd.xlane.f32.xlu1 %v883_v25  ;;  %1405 = vmatpush3.bf16.msra.mxu0 %v1404_v34 }
 0x672   : > { %v885_v26 = vpop.xlane.xlu1 %884 }
 0x673   : > { %v887_v27 = vmul.f32 0.03125, %v885_v26 }
 0x675   : > { %v888_v28 = vsub.f32 %v880_v24, %v887_v27 }
 0x677   : > { %v889_v29 = vmul.f32 %v888_v28, %v888_v28 }
 0x679   : > { %v890_v30 = vsel %vm414_vm1, %v889_v29, 0.0 }
 0x67a   : > { %891 = vadd.xlane.f32.xlu0 %v890_v30 }
 0x707   : > { %v892_v44 = vpop.xlane.xlu0 %891 }
 0x708   : > { %v893_v45 = vmul.f32 0.03125, %v892_v44 }
 0x70a   : > { %v894_v46 = vadd.f32 1e-05, %v893_v45 }
 0x70c   : > { %1517 = vrsqrt.f32 %v894_v46 }
 0x716   : > { %v1518_v47 = vpop.eup %1517 }
 0x717   : > { %v896_v49 = vmul.f32 %v1518_v47, %v888_v28 }
 0x719   : > { %v901_v51 = vmul.f32 %v1232_v48, %v896_v49 }
 0x71b   : > { %v906_v52 = vadd.f32 %v1233_v50, %v901_v51 }
 0x71d   : > { %1347 = vmatmul.mubr.msk.f32.vlgmr.msra.gmra.mrb[6].mxu0 %vm414_vm1, %v906_v52 }
 0x7f0   : > { %v987_v56 = vpop.f32.mrb[6].mxu0 }
 0x7f1   : > { %v988_v57 = vadd.f32 %v1234_v55, %v987_v56  ;;  %v1348_v58 = vpop.f32.mrb[7].mxu0 }
 0x7f3   : > { %v991_v59 = vmax.f32 %v988_v57, 0.0 }
 0x7f5   : > { %1366 = vmatmul.mubr.msk.f32.vlgmr.msra.gmra.mrb[4].mxu1 %vm1005_vm3, %v991_v59 }
 0x8c8   : > { %v1075_v61 = vpop.f32.mrb[4].mxu1 }
 0x8c9   : > { %v1076_v62 = vadd.f32 %v1236_v60, %v1075_v61  ;;  %v1367_v63 = vpop.f32.mrb[5].mxu1 }
 0x8cb   : > { %v1079_v2 = vadd.f32 %v1076_v62, %v906_v52 }
 0x8cd   : > { %v1082_v3 = vsel %vm414_vm1, %v1079_v2, 0.0 }
 0x8ce   : > { %1083 = vadd.xlane.f32.xlu0 %v1082_v3 }
 0x95b   : > { %v1084_v4 = vpop.xlane.xlu0 %1083 }
 0x95c   : > { %v1085_v5 = vmul.f32 0.03125, %v1084_v4 }
 0x95e   : > { %v1086_v6 = vsub.f32 %v1079_v2, %v1085_v5 }
 0x960   : > { %v1087_v7 = vmul.f32 %v1086_v6, %v1086_v6 }
 0x962   : > { %v1088_v8 = vsel %vm414_vm1, %v1087_v7, 0.0 }
 0x963   : > { %1089 = vadd.xlane.f32.xlu0 %v1088_v8 }
 0x9f0   : > { %v1090_v9 = vpop.xlane.xlu0 %1089 }
 0x9f1   : > { %v1091_v10 = vmul.f32 0.03125, %v1090_v9 }
 0x9f3   : > { %v1092_v11 = vadd.f32 1e-05, %v1091_v10 }
 0x9f5   : > { %1519 = vrsqrt.f32 %v1092_v11 }
 0x9ff   : > { %v1520_v13 = vpop.eup %1519 }
 0xa00   : > { %v1094_v15 = vmul.f32 %v1520_v13, %v1086_v6 }
 0xa02   : > { %v1099_v17 = vmul.f32 %v1238_v14, %v1094_v15 }
 0xa04   : > { %v1104_v18 = vadd.f32 %v1239_v16, %v1099_v17 }
 0xa06   : > { %1105 = vst.msk [vmem:[%s401_s19] sm:$0xff] %vm414_vm1, %v1104_v18 }
 0xa07   : > { %1620 = shalt.err (!%p1617_p7)
}
 0xa08   : > { %s1621_s8 = scalar_lea.hbm %s2053_s11, 128  ;;  %s1625_s26 = scalar_lea.hbm %s2108_s10, 256 }
 0xa09   : > { %p1622_p10 = scmp.ne.s32.totalorder %s2053_s11, %s1621_s8  ;;  %p1626_p0 = scmp.lt.u32.totalorder %s2053_s11, %s2108_s10 }
 0xa0a   : > { %p1627_p11 = scmp.lt.u32.totalorder %s1625_s26, %s1621_s8  ;;  %p1629_p2 = scmp.lt.u32.totalorder %s1621_s8, %s2053_s11 }
 0xa0b   : > { %p1623_p13 = pnand %p1622_p10, %p1859_p4 }
 0xa0c   : > { %p1628_p9 = por %p1627_p11, %p1626_p0 }
 0xa0d   : > { %p1624_p5 = pneg %p1623_p13 }
 0xa0e   : > { %p1630_p1 = por %p1629_p2, %p1628_p9 }
 0xa10   : > { %p1631_p6 = pnand %p1630_p1, %p1624_p5 }
 0xa12   : > { %1634 = shalt.err (!%p1631_p6)
}
 0xa13   : > { %1428 = dma.vmem_to_hbm [thread:$0]  (%p1859_p4), %s2055_s21, 128, %s2053_s11, %s1107_s25  }
 0xa14 PF: > { %s1132_s12 = sand.u32 1, %s1665_s13   ;;  %p2127_p8 = scmp.ne.s32.totalorder %s2115_s20, 0 }
 0xa15   : > { %p2128_p12 = scmp.ge.s32.totalorder %s1677_s16, 2  ;;  %s1133_s23 = scalar_lea.sflag [#allocation4], %s1132_s12 }
 0xa17   : > { %p1442_p3 = pnand %p2128_p12, %p2127_p8 }
 0xa19   : > { %1660 = dma.done.wait (!%p1442_p3), %s1133_s23, 128  }
 0xa1a   : > { %1662 = vsyncadd (!%p1442_p3), %s1133_s23, 4294967168  ;;  %p24_p7 = scmp.ge.s32.totalorder %s1849_s30, 4   ;;  %s2129_s13 = smov %s1669_s14 }
 0xa1b   : > { %s2130_s14 = smov %s1673_s15  ;;  %s2131_s15 = smov %s1865_s22 }
 0xa1c   : > { %s2132_s16 = smov %s1849_s30  ;;  %26 = sbr.rel (!%p24_p7) target bundleno = 9 (0x9), region = 113 }
 0xa23   :  { %1138 = vsyncpa [#allocation3], 1 }
 0xa24   :  { %1140 = vsyncpa [#allocation3 + $0x1], 1 }
 0xa25   :  { %1141 = vsyncpa [#allocation6], 1 }
 0xa26   :  { %1142 = vsyncpa [#allocation4], 1 }
 0xa27   :  { %1144 = vsyncpa [#allocation4 + $0x1], 1 }

</bundles_post_ra>
